<compile_context>
chip_gen: v7x
topology: tpu7x:2x2x1
jax: 0.10.0
libtpu: 0.0.40
codegen_flags: <defaults>
</compile_context>

<pallas_src>
import functools

import jax
import jax.numpy as jnp
from jax.experimental import pallas as pl
from jax.experimental.pallas import tpu as pltpu

LN_EPS = 1e-5  # PyTorch nn.LayerNorm default


def _round_up(x, m):
    return ((x + m - 1) // m) * m


def _cdiv(a, b):
    return -(-a // b)


def _layer_norm_f32(x_ref, g_ref, b_ref):
    """LayerNorm over the last axis, statistics in f32."""
    x = x_ref[...].astype(jnp.float32)
    mean = jnp.mean(x, axis=-1, keepdims=True)
    centered = x - mean
    var = jnp.mean(centered * centered, axis=-1, keepdims=True)
    inv = jax.lax.rsqrt(var + LN_EPS)                 # EUP
    return (centered * inv) * g_ref[...] + b_ref[...]  # affine in f32


def prenorm_linear_resident_kernel(x_ref, g_ref, b_ref, w_ref, wb_ref, o_ref):
    """Weight-resident variant (single column block = all of Dout_pad).

    x_ref : (bR, D)           input rows (native dtype)
    g_ref : (1, D)       f32  LayerNorm gamma
    b_ref : (1, D)       f32  LayerNorm beta
    w_ref : (D, Dout_pad)     W.T, resident in VMEM across the whole grid
    wb_ref: (1, Dout_pad) f32 Linear bias
    o_ref : (bR, Dout_pad)    output tile
    """
    y = _layer_norm_f32(x_ref, g_ref, b_ref).astype(w_ref.dtype)
    acc = jnp.dot(y, w_ref[...], preferred_element_type=jnp.float32)
    o_ref[...] = (acc + wb_ref[...]).astype(o_ref.dtype)


def prenorm_linear_tiled_kernel(x_ref, g_ref, b_ref, w_ref, wb_ref, o_ref, y_ref):
    """Column-tiled fallback for large D * D_out (weight does not fit VMEM).

    NOTE: correctness of the y_ref cache requires the column axis (grid axis 1)
    to remain the innermost, sequential ("arbitrary") grid axis so that j == 0
    executes first for every row block on its core.  Do not reorder the grid
    or mark axis 1 "parallel".
    """
    @pl.when(pl.program_id(1) == 0)
    def _():
        y_ref[...] = _layer_norm_f32(x_ref, g_ref, b_ref).astype(y_ref.dtype)

    acc = jnp.dot(y_ref[...], w_ref[...], preferred_element_type=jnp.float32)
    o_ref[...] = (acc + wb_ref[...]).astype(o_ref.dtype)


def prepare_prenorm_linear_params(gamma, beta, weight, bias, compute_dtype=None):
    """One-time parameter prep (call at init, NOT per forward).

    Casts LN affine params to f32, transposes the Linear weight to (D, D_out),
    and pads D_out up to a multiple of 128 so kernel output stores are
    lane-dense/unmasked.  Returns (gamma2, beta2, w_t_pad, wb_pad, d_out).
    """
    D_out, D = weight.shape
    if compute_dtype is None:
        compute_dtype = weight.dtype
    Dout_pad = max(_round_up(D_out, 128), 128)

    w_t = weight.T.astype(compute_dtype)                    # (D, D_out)
    wb = bias.astype(jnp.float32).reshape(1, D_out)         # f32, no bf16 trip
    if Dout_pad != D_out:
        w_t = jnp.pad(w_t, ((0, 0), (0, Dout_pad - D_out)))
        wb = jnp.pad(wb, ((0, 0), (0, Dout_pad - D_out)))

    gamma2 = gamma.astype(jnp.float32).reshape(1, D)
    beta2 = beta.astype(jnp.float32).reshape(1, D)
    return gamma2, beta2, w_t, wb, int(D_out)


@functools.partial(jax.jit, static_argnames=("d_out", "block_rows", "block_cols"))
def prenorm_linear(x, gamma2, beta2, w_t_pad, wb_pad, *, d_out,
                   block_rows=512, block_cols=1024):
    """x: (B, S, D) -> Linear(LayerNorm(x)), shape (B, S, d_out).

    gamma2/beta2: (1, D) f32; w_t_pad: (D, Dout_pad); wb_pad: (1, Dout_pad) f32,
    all produced once by prepare_prenorm_linear_params.
    """
    B, S, D = x.shape
    N = B * S
    Dout_pad = w_t_pad.shape[1]
    compute_dtype = w_t_pad.dtype

    x_bytes = jnp.dtype(x.dtype).itemsize
    w_bytes = jnp.dtype(compute_dtype).itemsize
    o_bytes = jnp.dtype(x.dtype).itemsize

    # ---- row tile: multiple of 8 (sublane), >= 2 blocks for v7x megacore ----
    bR = min(block_rows, _round_up(N, 8))
    bR = max(_round_up(bR, 8), 8)
    if N > 8 and _cdiv(N, bR) < 2:
        bR = max(_round_up(_cdiv(N, 2), 8), 8)   # split rows across both TCs
    n_row_blocks = _cdiv(N, bR)

    # No runtime pad of the activation: partial edge row block is masked.
    x2 = x.reshape(N, D)

    # ---- weight residency decision ----
    weight_bytes = D * Dout_pad * w_bytes
    resident = weight_bytes <= (4 << 20)

    if resident:
        bC = Dout_pad
        grid = (n_row_blocks,)
        kernel = prenorm_linear_resident_kernel
        in_specs = [
            pl.BlockSpec((bR, D), lambda i: (i, 0)),          # x rows
            pl.BlockSpec((1, D), lambda i: (0, 0)),           # gamma
            pl.BlockSpec((1, D), lambda i: (0, 0)),           # beta
            pl.BlockSpec((D, Dout_pad), lambda i: (0, 0)),    # W.T (resident)
            pl.BlockSpec((1, Dout_pad), lambda i: (0, 0)),    # bias (f32)
        ]
        out_specs = pl.BlockSpec((bR, Dout_pad), lambda i: (i, 0))
        scratch_shapes = ()
        dim_sem = ("parallel",)
        scratch_bytes = 0
    else:
        bC = max(_round_up(min(block_cols, Dout_pad), 128), 128)
        n_col_blocks = _cdiv(Dout_pad, bC)
        grid = (n_row_blocks, n_col_blocks)
        kernel = prenorm_linear_tiled_kernel
        in_specs = [
            pl.BlockSpec((bR, D), lambda i, j: (i, 0)),   # x rows (const over j)
            pl.BlockSpec((1, D), lambda i, j: (0, 0)),    # gamma
            pl.BlockSpec((1, D), lambda i, j: (0, 0)),    # beta
            pl.BlockSpec((D, bC), lambda i, j: (0, j)),   # W.T column tile
            pl.BlockSpec((1, bC), lambda i, j: (0, j)),   # bias tile (f32)
        ]
        out_specs = pl.BlockSpec((bR, bC), lambda i, j: (i, j))
        scratch_shapes = (pltpu.VMEM((bR, D), compute_dtype),)
        # Column axis MUST stay innermost + "arbitrary" (y_ref cache).
        dim_sem = ("parallel", "arbitrary")
        scratch_bytes = bR * D * w_bytes

    # ---- VMEM budget: tiles + compiler-materialized f32 temporaries ----
    est = (2 * bR * D * x_bytes        # x tile (double buffered)
           + 2 * D * bC * w_bytes      # weight tile (conservatively 2x)
           + 2 * bR * bC * o_bytes     # output tile
           + 2 * bC * 4                # f32 linear bias tile
           + 4 * D * 4                 # gamma / beta
           + scratch_bytes             # persistent y scratch (tiled path only)
           + 3 * bR * D * 4            # LayerNorm f32 intermediates
           + bR * bC * 4)              # f32 accumulator before output cast
    vmem_limit = min(max(int(est * 1.3) + (1 << 20), 16 << 20), 48 << 20)

    out2 = pl.pallas_call(
        kernel,
        out_shape=jax.ShapeDtypeStruct((N, Dout_pad), x.dtype),
        grid_spec=pltpu.PrefetchScalarGridSpec(
            num_scalar_prefetch=0,
            grid=grid,
            in_specs=in_specs,
            out_specs=out_specs,
            scratch_shapes=scratch_shapes,
        ),
        compiler_params=pltpu.CompilerParams(
            dimension_semantics=dim_sem,
            vmem_limit_bytes=vmem_limit,
        ),
    )(x2, gamma2, beta2, w_t_pad, wb_pad)

    return out2[:, :d_out].reshape(B, S, d_out)


def reference(x, gamma, beta, w_t, w_bias):
    xf = x.astype(jnp.float32)
    mean = jnp.mean(xf, axis=-1, keepdims=True)
    var = jnp.mean((xf - mean) ** 2, axis=-1, keepdims=True)
    xn = (xf - mean) * jax.lax.rsqrt(var + LN_EPS)
    y = xn * gamma.astype(jnp.float32) + beta.astype(jnp.float32)
    return y @ w_t.astype(jnp.float32) + w_bias.astype(jnp.float32)


if __name__ == "__main__":
    key = jax.random.PRNGKey(0)
    k_x, k_w, k_b = jax.random.split(key, 3)

    # small shapes consistent with the module: batch=2, seq=8, hidden dim=32
    B, S, D = 2, 8, 32

    x = jax.random.normal(k_x, (B, S, D), dtype=jnp.float32)

    # nn.LayerNorm(dim) default init: weight=1, bias=0
    gamma = jnp.ones((D,), dtype=jnp.float32)
    beta = jnp.zeros((D,), dtype=jnp.float32)

    # fn = nn.Linear(D, D), deterministically initialized in-script
    w = jax.random.normal(k_w, (D, D), dtype=jnp.float32) * 0.02   # (out, in)
    w_bias = jax.random.normal(k_b, (D,), dtype=jnp.float32) * 0.02

    # ---- f32 path (tight check) ----
    g2, b2, wt_pad, wb_pad, d_out = prepare_prenorm_linear_params(
        gamma, beta, w, w_bias)
    out = jax.block_until_ready(
        prenorm_linear(x, g2, b2, wt_pad, wb_pad, d_out=d_out))
    ref = reference(x, gamma, beta, w.T, w_bias)
    assert out.shape == (B, S, D)
    assert jnp.allclose(out.astype(jnp.float32), ref, atol=1e-5, rtol=1e-5), \
        "f32 mismatch vs reference"

    # ---- bf16 MXU path (f32 accumulation inside the kernel, looser tol) ----
    g2b, b2b, wt_bf, wb_f32, d_out = prepare_prenorm_linear_params(
        gamma, beta, w, w_bias, compute_dtype=jnp.bfloat16)
    x_bf = x.astype(jnp.bfloat16)
    out_bf = jax.block_until_ready(
        prenorm_linear(x_bf, g2b, b2b, wt_bf, wb_f32, d_out=d_out))
    ref_bf = reference(x_bf, gamma, beta, w.T.astype(jnp.bfloat16), w_bias)
    assert out_bf.shape == (B, S, D)
    assert jnp.allclose(out_bf.astype(jnp.float32), ref_bf, atol=3e-2, rtol=3e-2), \
        "bf16 mismatch vs reference"

    print("KERNEL_OK")
</pallas_src>

<mosaic_0001>
module attributes {stable_mosaic.version = 11 : i64} {
  func.func @prenorm_linear_resident_kernel(%arg0: i32, %arg1: memref<8x32xf32, #tpu.memory_space<vmem>>, %arg2: memref<1x32xf32, #tpu.memory_space<vmem>>, %arg3: memref<1x32xf32, #tpu.memory_space<vmem>>, %arg4: memref<32x128xf32, #tpu.memory_space<vmem>>, %arg5: memref<1x128xf32, #tpu.memory_space<vmem>>, %arg6: memref<8x128xf32, #tpu.memory_space<vmem>>) attributes {dimension_semantics = [#tpu.dimension_semantics<parallel>], iteration_bounds = array<i64: 2>, scalar_prefetch = 0 : i64, scratch_operands = 0 : i64, tpu.core_type = #tpu.core_type<tc>, window_params = [{transform_indices = @transform_0, window_bounds = array<i64: 8, 32>}, {pipeline_mode = #tpu.pipeline_mode<synchronous>, transform_indices = @transform_1, window_bounds = array<i64: 1, 32>}, {pipeline_mode = #tpu.pipeline_mode<synchronous>, transform_indices = @transform_2, window_bounds = array<i64: 1, 32>}, {pipeline_mode = #tpu.pipeline_mode<synchronous>, transform_indices = @transform_3, window_bounds = array<i64: 32, 128>}, {pipeline_mode = #tpu.pipeline_mode<synchronous>, transform_indices = @transform_4, window_bounds = array<i64: 1, 128>}, {transform_indices = @transform_5, window_bounds = array<i64: 8, 128>}]} {
    %c0 = arith.constant 0 : index
    %c0_0 = arith.constant 0 : index
    %0 = vector.load %arg1[%c0, %c0_0] : memref<8x32xf32, #tpu.memory_space<vmem>>, vector<8x32xf32>
    %cst = arith.constant dense<0.000000e+00> : vector<8xf32>
    %1 = vector.multi_reduction <add>, %0, %cst [1] : vector<8x32xf32> to vector<8xf32>
    %2 = vector.shape_cast %1 : vector<8xf32> to vector<8x1xf32>
    %cst_1 = arith.constant 3.200000e+01 : f32
    %3 = vector.broadcast %cst_1 : f32 to vector<8x1xf32>
    %4 = arith.divf %2, %3 : vector<8x1xf32>
    %5 = vector.broadcast %4 : vector<8x1xf32> to vector<8x32xf32>
    %6 = arith.subf %0, %5 : vector<8x32xf32>
    %7 = arith.mulf %6, %6 : vector<8x32xf32>
    %cst_2 = arith.constant dense<0.000000e+00> : vector<8xf32>
    %8 = vector.multi_reduction <add>, %7, %cst_2 [1] : vector<8x32xf32> to vector<8xf32>
    %9 = vector.shape_cast %8 : vector<8xf32> to vector<8x1xf32>
    %cst_3 = arith.constant 3.200000e+01 : f32
    %10 = vector.broadcast %cst_3 : f32 to vector<8x1xf32>
    %11 = arith.divf %9, %10 : vector<8x1xf32>
    %cst_4 = arith.constant 9.99999974E-6 : f32
    %12 = vector.broadcast %cst_4 : f32 to vector<8x1xf32>
    %13 = arith.addf %11, %12 : vector<8x1xf32>
    %14 = math.rsqrt %13 : vector<8x1xf32>
    %15 = vector.broadcast %14 : vector<8x1xf32> to vector<8x32xf32>
    %16 = arith.mulf %6, %15 : vector<8x32xf32>
    %c0_5 = arith.constant 0 : index
    %c0_6 = arith.constant 0 : index
    %17 = vector.load %arg2[%c0_5, %c0_6] : memref<1x32xf32, #tpu.memory_space<vmem>>, vector<1x32xf32>
    %18 = vector.broadcast %17 : vector<1x32xf32> to vector<8x32xf32>
    %19 = arith.mulf %16, %18 : vector<8x32xf32>
    %c0_7 = arith.constant 0 : index
    %c0_8 = arith.constant 0 : index
    %20 = vector.load %arg3[%c0_7, %c0_8] : memref<1x32xf32, #tpu.memory_space<vmem>>, vector<1x32xf32>
    %21 = vector.broadcast %20 : vector<1x32xf32> to vector<8x32xf32>
    %22 = arith.addf %19, %21 : vector<8x32xf32>
    %c0_9 = arith.constant 0 : index
    %c0_10 = arith.constant 0 : index
    %23 = vector.load %arg4[%c0_9, %c0_10] : memref<32x128xf32, #tpu.memory_space<vmem>>, vector<32x128xf32>
    %cst_11 = arith.constant dense<0.000000e+00> : vector<8x128xf32>
    %24 = tpu.matmul %22, %23, %cst_11 {dimension_numbers = #tpu.dot_dimension_numbers<[1], [0], [0], [1], [0, 0, 1, 1], [], []>} : vector<8x32xf32>, vector<32x128xf32>, vector<8x128xf32> -> vector<8x128xf32>
    %c0_12 = arith.constant 0 : index
    %c0_13 = arith.constant 0 : index
    %25 = vector.load %arg5[%c0_12, %c0_13] : memref<1x128xf32, #tpu.memory_space<vmem>>, vector<1x128xf32>
    %26 = vector.broadcast %25 : vector<1x128xf32> to vector<8x128xf32>
    %27 = arith.addf %24, %26 : vector<8x128xf32>
    %c0_14 = arith.constant 0 : index
    %c0_15 = arith.constant 0 : index
    %28 = vector.load %arg6[%c0_14, %c0_15] : memref<8x128xf32, #tpu.memory_space<vmem>>, vector<8x128xf32>
    tpu.vector_store %arg6[%c0_14, %c0_15], %27 {strides = array<i32>} : memref<8x128xf32, #tpu.memory_space<vmem>>, vector<8x128xf32>,
    return
  }
  func.func @transform_0(%arg0: i32) -> (i32, i32) {
    %c0_i32 = arith.constant 0 : i32
    %c0_i32_0 = arith.constant 0 : i32
    return %arg0, %c0_i32 : i32, i32
  }
  func.func @transform_1(%arg0: i32) -> (i32, i32) {
    %c0_i32 = arith.constant 0 : i32
    %c0_i32_0 = arith.constant 0 : i32
    %c0_i32_1 = arith.constant 0 : i32
    return %c0_i32, %c0_i32_0 : i32, i32
  }
  func.func @transform_2(%arg0: i32) -> (i32, i32) {
    %c0_i32 = arith.constant 0 : i32
    %c0_i32_0 = arith.constant 0 : i32
    %c0_i32_1 = arith.constant 0 : i32
    return %c0_i32, %c0_i32_0 : i32, i32
  }
  func.func @transform_3(%arg0: i32) -> (i32, i32) {
    %c0_i32 = arith.constant 0 : i32
    %c0_i32_0 = arith.constant 0 : i32
    %c0_i32_1 = arith.constant 0 : i32
    return %c0_i32, %c0_i32_0 : i32, i32
  }
  func.func @transform_4(%arg0: i32) -> (i32, i32) {
    %c0_i32 = arith.constant 0 : i32
    %c0_i32_0 = arith.constant 0 : i32
    %c0_i32_1 = arith.constant 0 : i32
    return %c0_i32, %c0_i32_0 : i32, i32
  }
  func.func @transform_5(%arg0: i32) -> (i32, i32) {
    %c0_i32 = arith.constant 0 : i32
    %c0_i32_0 = arith.constant 0 : i32
    return %arg0, %c0_i32 : i32, i32
  }
}

</mosaic_0001>

<bundles_post_ra>
// kernel: prenorm_linear.1
= control target key start
LH: loop header
LB: loop body
LE: loop exit
PB: predicated region body
PF: predicated region fallthrough
CT: control target
= control target key end

     0   :  { %10 = vsyncpa [#allocation3], 0  ;;  %s828_s0 = inlined_call_operand.hbm [shape: f32[16,32], index: 0, kind: input, shape index: {}]   ;;  %s829_s1 = inlined_call_operand.vmem [shape: f32[1,32], index: 1, kind: input, shape index: {}]   ;;  %s830_s2 = inlined_call_operand.vmem [shape: f32[1,32], index: 2, kind: input, shape index: {}]   ;;  %s831_s3 = inlined_call_operand.hbm [shape: f32[32,128], index: 3, kind: input, shape index: {}]   ;;  %s832_s4 = inlined_call_operand.vmem [shape: f32[1,128], index: 4, kind: input, shape index: {}]   ;;  %s833_s5 = inlined_call_operand.vmem [shape: f32[16,128], index: 5, kind: output, shape index: {}]  }
   0x1   :  { %12 = vsyncpa [#allocation3 + $0x1], 0 }
   0x2   :  { %13 = vsyncpa [#allocation5], 0  ;;  %s677_s18 = smov 0   ;;  %s679_s19 = smov 0  }
   0x3   :  { %s681_s20 = smov 0   ;;  %s683_s21 = smov 0  }
   0x4 LB: > { %s696_s22 = sadd.s32 4294967295, %s638_s21   ;;  %p39_p0 = scmp.ne.s32.totalorder %s630_s19, %s626_s18  ;;  %s638_s21 = sphi %s683_s21, %s849_s21   ;;  %s634_s20 = sphi %s681_s20, %s848_s20   ;;  %s630_s19 = sphi %s679_s19, %s847_s19   ;;  %s626_s18 = sphi %s677_s18, %s846_s18  }
   0x5   : > { %p834_p1 = scmp.eq.s32.totalorder %s696_s22, 0  ;;  %p448_p2 = scmp.ge.s32.totalorder %s638_s21, 1 }
   0x6   : > { %p160_p3 = scmp.lt.s32.totalorder %s638_s21, 3  ;;  %s640_s25 = smov [#allocation4]  }
   0x7   : > { %p704_p4 = por %p834_p1, %p39_p0  ;;  %s178_s26 = sshll.u32 %s640_s25, 4  ;;  %s179_s26 = int_to_ptr.vmem [resolvable:$true] %s178_s26 }
   0x8   : > { %p708_p5 = pnand %p448_p2, %p160_p3  ;;  %s721_s28 = sadd.s32 1, %s638_s21  }
   0x9   : > { %s837_s23 = scalar_select %p704_p4, 1, 0 }
   0xa   : > { %s838_s24 = scalar_select %p708_p5, 1, 0 }
   0xb   : > { %p491_p6 = pneg %p708_p5  ;;  %s26_s29 = sadd.s32 1, %s634_s20 }
   0xc   : > { %s23_s30 = ssub.s32 %s638_s21, %s721_s28  ;;  %s542_s8 = scalar_lea.hbm %s831_s3, 512 }
   0xd   : > { %p716_p7 = pnand %p491_p6, %p834_p1  ;;  %p543_p8 = scmp.ne.s32.totalorder %s831_s3, %s542_s8 }
   0xe   : > { %p549_p12 = scmp.lt.u32.totalorder %s542_s8, %s831_s3 }
   0xf   : > { %p544_p9 = pneg %p716_p7 }
  0x11   : > { %p545_p10 = pnand %p544_p9, %p543_p8 }
  0x13   : > { %p546_p11 = pneg %p545_p10 }
  0x15   : > { %p551_p13 = pnand %p549_p12, %p546_p11 }
  0x17   : > { %554 = shalt.err (!%p551_p13)
}
  0x18   : > { %s555_s13 = scalar_lea.vmem %s179_s26, 512  ;;  %p563_p6 = scmp.lt.s32.totalorder %s179_s26, %s179_s26 }
  0x19   : > { %p556_p0 = scmp.ne.s32.totalorder %s179_s26, %s555_s13  ;;  %p564_p1 = scmp.lt.s32.totalorder %s555_s13, %s555_s13 }
  0x1b   : > { %p558_p2 = pnand %p556_p0, %p544_p9  ;;  %p565_p4 = por %p564_p1, %p563_p6 }
  0x1d   : > { %p559_p3 = pneg %p558_p2 }
  0x1f   : > { %p566_p5 = pnand %p565_p4, %p559_p3 }
  0x21   : > { %569 = shalt.err (!%p566_p5)
}
  0x22   : > { %s641_s14 = smov 128   ;;  %s642_s15 = smov 8  }
  0x23   : > { %494 = dma.hbm_to_vmem [thread:$0]  (!%p716_p7), %s831_s3, 512, %s179_s26, [#allocation5], %s641_s14, %s641_s14, %s642_s15  }
  0x24   : > { %p24_p8 = scmp.eq.s32.totalorder %s23_s30, 0  ;;  %p33_p9 = scmp.ne.s32.totalorder %s634_s20, %s630_s19 }
  0x25   : > { %p34_p1 = scmp.eq.s32.totalorder %s638_s21, 0  ;;  %p500_p4 = scmp.lt.s32.totalorder %s638_s21, 2 }
  0x26   : > { %s747_s18 = scalar_select %p24_p8, %s634_s20, %s26_s29  }
  0x27   : > { %p35_p5 = por %p34_p1, %p33_p9  ;;  %s195_s25 = sand.u32 1, %s634_s20  }
  0x28   : > { %s451_s6 = sshll.u32 %s195_s25, 3  ;;  %s452_s7 = sshll.u32 %s638_s21, 7 }
  0x29   : > { %s754_s10 = scalar_lea.hbm %s828_s0, %s452_s7  ;;  %s199_s26 = scalar_lea.vmem [#allocation2], %s451_s6 }
  0x2a   : > { %s206_s27 = sshll.u32 %s199_s26, 4  ;;  %p758_p7 = pnand %p500_p4, %p35_p5  ;;  %s756_s27 = int_to_ptr.vmem [resolvable:$true] %s206_s27 }
  0x2b   : > { %s196_s21 = scalar_lea.sflag [#allocation3], %s195_s25  ;;  %s570_s30 = scalar_lea.hbm %s754_s10, 128 }
  0x2c   : > { %p571_p10 = scmp.ne.s32.totalorder %s754_s10, %s570_s30  ;;  %p572_p11 = pneg %p758_p7 }
  0x2d   : > { %s575_s13 = scalar_lea.hbm %s828_s0, 256  ;;  %p576_p0 = scmp.lt.u32.totalorder %s754_s10, %s828_s0 }
  0x2e   : > { %p573_p12 = pnand %p572_p11, %p571_p10  ;;  %p577_p2 = scmp.lt.u32.totalorder %s575_s13, %s570_s30 }
  0x2f   : > { %p579_p6 = scmp.lt.u32.totalorder %s570_s30, %s754_s10 }
  0x30   : > { %p574_p13 = pneg %p573_p12  ;;  %p578_p3 = por %p577_p2, %p576_p0 }
  0x32   : > { %p580_p8 = por %p579_p6, %p578_p3 }
  0x34   : > { %p581_p9 = pnand %p580_p8, %p574_p13 }
  0x36   : > { %584 = shalt.err (!%p581_p9)
}
  0x37   : > { %s585_s16 = scalar_lea.vmem %s756_s27, 128  ;;  %s643_s17 = smov [#allocation2]  }
  0x38   : > { %p586_p1 = scmp.ne.s32.totalorder %s756_s27, %s585_s16  ;;  %s590_s25 = sshll.u32 %s643_s17, 4  ;;  %s591_s25 = int_to_ptr.vmem [resolvable:$false] %s590_s25 }
  0x39   : > { %s592_s6 = scalar_lea.vmem %s591_s25, 256  ;;  %p593_p10 = scmp.lt.s32.totalorder %s756_s27, %s591_s25 }
  0x3a   : > { %p588_p4 = pnand %p586_p1, %p572_p11  ;;  %p594_p12 = scmp.lt.s32.totalorder %s592_s6, %s585_s16 }
  0x3c   : > { %p589_p5 = pneg %p588_p4  ;;  %p595_p0 = por %p594_p12, %p593_p10 }
  0x3e   : > { %p596_p2 = pnand %p595_p0, %p589_p5 }
  0x40   : > { %599 = shalt.err (!%p596_p2)
}
  0x41   : > { %498 = dma.hbm_to_vmem [thread:$0]  (!%p758_p7), %s754_s10, 128, %s756_s27, %s196_s21  }
  0x42   : > { %p841_p13 = scmp.ne.s32.totalorder %s838_s24, 0 }
  0x43   : > { %s217_s7 = sand.u32 (!%p841_p13), 1, %s630_s19   ;;  %p842_p11 = scmp.ne.s32.totalorder (!%p841_p13), %s837_s23, 0 }
  0x44   : > { %215 = sbr.rel (%p841_p13) target bundleno = 608 (0x260), region = 40  ;;  %s454_s8 = sshll.u32 (!%p841_p13), %s217_s7, 3 }
  0x45   : > { %s218_s9 = scalar_lea.sflag (!%p841_p13), [#allocation3], %s217_s7  ;;  %s221_s26 = scalar_lea.vmem (!%p841_p13), [#allocation2], %s454_s8 }
  0x4b   : > { %617 = dma.done.wait (%p842_p11), %s218_s9, 128  }
  0x4c   : > { %619 = vsyncadd (%p842_p11), %s218_s9, 4294967168  ;;  %p843_p3 = scmp.eq.s32.totalorder %s696_s22, 0 }
  0x4e   : > { %621 = dma.done.wait (%p843_p3), [#allocation5], 512   ;;  %p844_p6 = pmov %p843_p3 }
  0x4f   : > { %vm256_vm0 = vcmask 261120   ;;  %v255_v0 = vld [vmem:[%s221_s26] sm:$0xff]  ;;  %v287_v7 = vld [vmem:[#allocation4] sm:$0xff]  ;;  %v288_v8 = vld [vmem:[#allocation4 + $0x8] sm:$0xff]  ;;  %v644_v10 = vmov 0.0|0.0   ;;  %vm645_vm1 = vmmov 0  }
  0x50   : > { %623 = vsyncadd (%p844_p6), [#allocation5], 4294966784  ;;  %v257_v1 = vsel %vm256_vm0, %v255_v0, 0.0  ;;  %v289_v9 = vld [vmem:[#allocation4 + $0x10] sm:$0xff]  ;;  %479 = vmatprep.subr.bf16.mxu0 %v644_v10  ;;  %v480_v11 = vpack.c.bf16 %v288_v8, %v287_v7  ;;  %v290_v12 = vld [vmem:[#allocation4 + $0x18] sm:$0xff]  ;;  %v646_v13 = vmov 0.0  }
  0x51   : > { %258 = vadd.xlane.f32.xlu0 %v257_v1  ;;  %476 = vmatprep.mubr.msk.f32.mxu0 %vm645_vm1, %v646_v13  ;;  %v483_v14 = vpack.c.bf16 %v290_v12, %v289_v9  ;;  %v457_v19 = vld [vmem:[%s829_s1] ss:$0 sm:$0xff]  ;;  %p251_p7 = scmp.lt.s32.totalorder %s696_s22, 1 }
  0x52   : > { %481 = vmatpush3.bf16.msra.mxu0 %v480_v11  ;;  %v458_v21 = vld [vmem:[%s830_s2] ss:$0 sm:$0xff] }
  0x53   : > { %482 = vmatprep.subr.bf16.mxu0 %v644_v10  ;;  %s851_s22 = smov (!%p251_p7, %s696_s22), 1  ;;  %v459_v24 = vld [vmem:[%s832_s4] ss:$0 sm:$0xff] }
  0x54   : > { %s456_s29 = sshll.u32 %s851_s22, 3 }
  0x55   : > { %s254_s13 = scalar_lea.vmem %s833_s5, %s456_s29 }
  0x56   : > { %484 = vmatpush3.bf16.msra.mxu0 %v483_v14 }
  0xde   : > { %v259_v2 = vpop.xlane.xlu0 %258 }
  0xdf   : > { %v261_v3 = vmul.f32 0.03125, %v259_v2 }
  0xe1   : > { %v262_v4 = vsub.f32 %v255_v0, %v261_v3 }
  0xe3   : > { %v263_v5 = vmul.f32 %v262_v4, %v262_v4 }
  0xe5   : > { %v264_v6 = vsel %vm256_vm0, %v263_v5, 0.0 }
  0xe6   : > { %265 = vadd.xlane.f32.xlu0 %v264_v6 }
 0x173   : > { %v266_v15 = vpop.xlane.xlu0 %265 }
 0x174   : > { %v267_v16 = vmul.f32 0.03125, %v266_v15 }
 0x176   : > { %v268_v17 = vadd.f32 1e-05, %v267_v16 }
 0x178   : > { %540 = vrsqrt.f32 %v268_v17 }
 0x182   : > { %v541_v18 = vpop.eup %540 }
 0x183   : > { %v270_v20 = vmul.f32 %v541_v18, %v262_v4 }
 0x185   : > { %v278_v22 = vmul.f32 %v457_v19, %v270_v20 }
 0x187   : > { %v286_v23 = vadd.f32 %v458_v21, %v278_v22 }
 0x189   : > { %477 = vmatmul.mubr.msk.f32.vlgmr.msra.gmra.mrb[0].mxu0 %vm256_vm0, %v286_v23 }
 0x25c   : > { %v367_v25 = vpop.f32.mrb[0].mxu0 }
 0x25d   : > { %v368_v26 = vadd.f32 %v459_v24, %v367_v25  ;;  %v478_v27 = vpop.f32.mrb[1].mxu0 }
 0x25f   : > { %371 = vst [vmem:[%s254_s13] sm:$0xff] %v368_v26 }
 0x260 PF: > { %s845_s14 = smov %s747_s18  ;;  %p16_p8 = scmp.ge.s32.totalorder %s721_s28, 4  }
 0x261   : > { %s846_s18 = smov %s630_s19  ;;  %s847_s19 = smov %s634_s20 }
 0x262   : > { %s848_s20 = smov %s845_s14  ;;  %s849_s21 = smov %s721_s28 }
 0x263   :  { %18 = sbr.rel (!%p16_p8) target bundleno = 4 (0x4), region = 84 }
 0x26a   :  { %391 = vsyncpa [#allocation3], 1 }
 0x26b   :  { %393 = vsyncpa [#allocation3 + $0x1], 1 }
 0x26c   :  { %394 = vsyncpa [#allocation5], 1 }

</bundles_post_ra>
